<compile_context>
chip_gen: v7x
topology: tpu7x:2x2x1
jax: 0.10.0
libtpu: 0.0.40
codegen_flags: <defaults>
</compile_context>

<pallas_src>
import functools

import jax
import jax.numpy as jnp
from jax import lax
from jax.experimental import pallas as pl
from jax.experimental.pallas import tpu as pltpu


# ---------------------------------------------------------------------------
# Kernel 1: tiled, pipelined matvec   res = W @ x   (streams W exactly once)
# ---------------------------------------------------------------------------
def _matvec_kernel(x_ref, w_ref, res_ref):
    # x_ref: (1, TS)   w_ref: (TN, TS)   res_ref: (1, TN) resident over s axis.
    @pl.when(pl.program_id(1) == 0)
    def _():
        res_ref[...] = jnp.zeros_like(res_ref)

    res_ref[...] += lax.dot_general(
        x_ref[...], w_ref[...], (((1,), (1,)), ((), ())),
        preferred_element_type=jnp.float32)


# ---------------------------------------------------------------------------
# Kernel 2: top-(k+1) of the (1, N) result -> sorted vals and indices
# ---------------------------------------------------------------------------
def _topk_kernel(k, res_ref, vals_ref, inds_ref):
    res = res_ref[...]                                    # (1, N)
    n = res.shape[-1]
    col_iota = lax.broadcasted_iota(jnp.int32, res.shape, 1)
    out_iota = lax.broadcasted_iota(jnp.int32, (1, k + 1), 1)

    vals = jnp.zeros((1, k + 1), jnp.float32)
    inds = jnp.zeros((1, k + 1), jnp.int32)
    masked = res
    for j in range(k + 1):                                # k is small & static
        m = jnp.max(masked)
        hit = masked == m                                 # reused mask
        idx = jnp.min(jnp.where(hit, col_iota, n))        # first occurrence on ties
        vals = jnp.where(out_iota == j, m, vals)
        inds = jnp.where(out_iota == j, idx, inds)
        masked = jnp.where(col_iota == idx, -jnp.inf, masked)
    vals_ref[...] = vals
    inds_ref[...] = inds


# ---------------------------------------------------------------------------
# Kernel 3: sparse updates.  Only the k winning rows of W are read, updated
# and written back; the weight input is aliased to the weight output so the
# untouched rows are never copied.  responses / age are small (1, N) vectors.
# ---------------------------------------------------------------------------
def _update_kernel(k, inds_ref, vals_ref, age_s_ref, x_ref, age_ref, w_hbm,
                   resp_ref, new_w_hbm, new_age_ref, rows_buf, sem):
    # Kick off reads of the k winning rows from the (aliased) HBM weight buffer.
    reads = []
    for i in range(k):
        cp = pltpu.make_async_copy(
            w_hbm.at[pl.ds(inds_ref[i], 1), :],
            rows_buf.at[pl.ds(i, 1), :],
            sem.at[i])
        cp.start()
        reads.append(cp)

    v_last = vals_ref[k]
    inv_denom = 1.0 / (vals_ref[0] - v_last)

    # responses / age: only k lanes change; these vectors are tiny (N floats).
    n = resp_ref.shape[-1]
    col_iota = lax.broadcasted_iota(jnp.int32, (1, n), 1)
    responses = jnp.zeros((1, n), jnp.float32)
    new_age = age_ref[...]
    for i in range(k):
        sel = col_iota == inds_ref[i]
        responses = jnp.where(sel, (vals_ref[i] - v_last) * inv_denom, responses)
        new_age = jnp.where(sel, new_age + 1.0, new_age)
    resp_ref[...] = responses
    new_age_ref[...] = new_age

    # k-row weight update:  new_row = (1 - 1/age)*row + (resp/age) * x
    for cp in reads:
        cp.wait()
    x = x_ref[...]                                        # (1, S)
    for i in range(k):
        inv_age = 1.0 / age_s_ref[inds_ref[i]]            # scalar SMEM gather
        scale_i = (vals_ref[i] - v_last) * inv_denom
        rows_buf[pl.ds(i, 1), :] = (
            (1.0 - inv_age) * rows_buf[pl.ds(i, 1), :] + (scale_i * inv_age) * x)

    writes = []
    for i in range(k):
        cp = pltpu.make_async_copy(
            rows_buf.at[pl.ds(i, 1), :],
            new_w_hbm.at[pl.ds(inds_ref[i], 1), :],
            sem.at[i])
        cp.start()
        writes.append(cp)
    for cp in writes:
        cp.wait()


# ---------------------------------------------------------------------------
# Wrapper
# ---------------------------------------------------------------------------
def _pick_tile(dim, preferred):
    """Largest multiple of 128 dividing `dim` that is <= preferred, else dim."""
    best = None
    t = 128
    while t <= min(dim, preferred):
        if dim % t == 0:
            best = t
        t += 128
    return best if best is not None else dim


def competition_zone_forward(x, weight, age, k):
    """Returns (responses, new_weight, new_age, res).

    `res` (the pre-activation W @ x) is returned for inspection/testing.
    NOTE: `weight` is aliased to the new_weight output (in-place row update);
    treat it as donated after this call.
    """
    num_neurons, size = weight.shape
    x_flat = x.reshape(1, size).astype(jnp.float32)
    w = weight.astype(jnp.float32)
    age_row = age.reshape(1, num_neurons).astype(jnp.float32)
    age_flat = age.reshape(num_neurons).astype(jnp.float32)

    # --- Phase 1: res = W @ x, streaming W through a double-buffered grid. ---
    # ~1 MiB W blocks (x2 for double-buffering) fit the scoped VMEM limit on
    # every generation, including v7x's smaller 64 MiB physical VMEM.
    tile_n = _pick_tile(num_neurons, 256)
    tile_s = _pick_tile(size, 1024)
    grid = (num_neurons // tile_n, size // tile_s)

    res = pl.pallas_call(
        _matvec_kernel,
        out_shape=jax.ShapeDtypeStruct((1, num_neurons), jnp.float32),
        grid=grid,
        in_specs=[
            pl.BlockSpec((1, tile_s), lambda i, s: (0, s)),
            pl.BlockSpec((tile_n, tile_s), lambda i, s: (i, s)),
        ],
        out_specs=pl.BlockSpec((1, tile_n), lambda i, s: (0, i)),
        compiler_params=pltpu.CompilerParams(
            dimension_semantics=("parallel", "arbitrary")),
        cost_estimate=pl.CostEstimate(
            flops=2 * num_neurons * size,
            transcendentals=0,
            bytes_accessed=4 * (num_neurons * size + size + num_neurons)),
    )(x_flat, w)

    # --- Phase 2: top-(k+1) over the (1, N) result (tiny). -------------------
    vals, inds = pl.pallas_call(
        functools.partial(_topk_kernel, k),
        out_shape=(jax.ShapeDtypeStruct((1, k + 1), jnp.float32),
                   jax.ShapeDtypeStruct((1, k + 1), jnp.int32)),
        in_specs=[pl.BlockSpec(memory_space=pltpu.MemorySpace.VMEM)],
        out_specs=(pl.BlockSpec(memory_space=pltpu.MemorySpace.VMEM),
                   pl.BlockSpec(memory_space=pltpu.MemorySpace.VMEM)),
    )(res)

    # --- Phase 3: sparse updates (k rows of W, k lanes of responses / age). --
    responses, new_w, new_age = pl.pallas_call(
        functools.partial(_update_kernel, k),
        out_shape=(
            jax.ShapeDtypeStruct((1, num_neurons), jnp.float32),
            jax.ShapeDtypeStruct((num_neurons, size), jnp.float32),
            jax.ShapeDtypeStruct((1, num_neurons), jnp.float32),
        ),
        in_specs=[
            pl.BlockSpec(memory_space=pltpu.MemorySpace.SMEM),   # inds   (k+1,)
            pl.BlockSpec(memory_space=pltpu.MemorySpace.SMEM),   # vals   (k+1,)
            pl.BlockSpec(memory_space=pltpu.MemorySpace.SMEM),   # age    (N,)
            pl.BlockSpec(memory_space=pltpu.MemorySpace.VMEM),   # x      (1, S)
            pl.BlockSpec(memory_space=pltpu.MemorySpace.VMEM),   # age    (1, N)
            pl.BlockSpec(memory_space=pl.ANY),                   # W      (N, S) HBM
        ],
        out_specs=(
            pl.BlockSpec(memory_space=pltpu.MemorySpace.VMEM),   # responses
            pl.BlockSpec(memory_space=pl.ANY),                   # new_w (aliased)
            pl.BlockSpec(memory_space=pltpu.MemorySpace.VMEM),   # new_age
        ),
        scratch_shapes=[
            pltpu.VMEM((k, size), jnp.float32),
            pltpu.SemaphoreType.DMA((k,)),
        ],
        input_output_aliases={5: 1},  # weight input -> new_w output (in place)
        compiler_params=pltpu.CompilerParams(has_side_effects=True),
        cost_estimate=pl.CostEstimate(
            flops=3 * k * size,
            transcendentals=0,
            bytes_accessed=4 * (2 * k * size + 3 * num_neurons + size)),
    )(inds.reshape(k + 1), vals.reshape(k + 1), age_flat, x_flat, age_row, w)

    return (responses.reshape(num_neurons), new_w,
            new_age.reshape(num_neurons), res.reshape(num_neurons))


if __name__ == "__main__":
    key = jax.random.PRNGKey(0)
    kx, kw = jax.random.split(key)

    num_neurons, k = 512, 4
    x_shape = (2, 4, 16, 16)
    size = 2 * 4 * 16 * 16  # 2048 = numel(x) (torch forward flattens everything)

    x = jax.random.normal(kx, x_shape, jnp.float32)
    bound = 1.0 / (size ** 0.5)  # torch nn.Linear default init range
    weight = jax.random.uniform(kw, (num_neurons, size), jnp.float32, -bound, bound)
    age = jnp.ones((num_neurons,), jnp.float32)

    # Keep an independent copy of W: the kernel aliases/donates `weight`.
    weight_ref = weight + 0.0
    xf = x.reshape(-1)

    responses, new_w, new_age, res = competition_zone_forward(x, weight, age, k)
    jax.block_until_ready((responses, new_w, new_age, res))

    # (1) Matvec sanity vs a high-precision XLA reference (loose tolerance:
    #     the MXU f32 path is implementation-defined bf16-pass based).
    res_hp = jnp.dot(weight_ref, xf, precision=lax.Precision.HIGHEST)
    assert jnp.allclose(res, res_hp, atol=2e-2, rtol=1e-2), "matvec mismatch"

    # (2) Exact check of top-k / response scaling / sparse row update / age,
    #     computed from the kernel's own matvec result (pure f32 elementwise).
    vals_r, inds_r = lax.top_k(res, k + 1)
    resp_r = jnp.zeros_like(res).at[inds_r[:-1]].set(
        (vals_r[:-1] - vals_r[-1]) / (vals_r[0] - vals_r[-1]))
    inv_age = 1.0 / age[inds_r[:-1]]
    rows = (1.0 - inv_age)[:, None] * weight_ref[inds_r[:-1]] + (
        resp_r[inds_r[:-1]] * inv_age)[:, None] * xf[None, :]
    w_r = weight_ref.at[inds_r[:-1]].set(rows)
    age_r = age.at[inds_r[:-1]].add(1.0)

    assert jnp.allclose(responses, resp_r, atol=1e-5), "responses mismatch"
    assert jnp.allclose(new_w, w_r, atol=1e-5), "weight update mismatch"
    assert jnp.allclose(new_age, age_r), "age update mismatch"

    print("KERNEL_OK")
</pallas_src>

<mosaic_0001>
module attributes {stable_mosaic.version = 11 : i64} {
  func.func @_matvec_kernel(%arg0: i32, %arg1: i32, %arg2: memref<1x1024xf32, #tpu.memory_space<vmem>>, %arg3: memref<256x1024xf32, #tpu.memory_space<vmem>>, %arg4: memref<1x256xf32, #tpu.memory_space<vmem>>) attributes {dimension_semantics = [#tpu.dimension_semantics<parallel>, #tpu.dimension_semantics<arbitrary>], iteration_bounds = array<i64: 2, 2>, scalar_prefetch = 0 : i64, scratch_operands = 0 : i64, tpu.core_type = #tpu.core_type<tc>, window_params = [{transform_indices = @transform_0, window_bounds = array<i64: 1, 1024>}, {transform_indices = @transform_1, window_bounds = array<i64: 256, 1024>}, {transform_indices = @transform_2, window_bounds = array<i64: 1, 256>}]} {
    %c0_i32 = arith.constant 0 : i32
    %0 = arith.cmpi eq, %arg1, %c0_i32 : i32
    %1 = arith.extui %0 : i1 to i32
    %c0_i32_0 = arith.constant 0 : i32
    %2 = arith.cmpi ne, %1, %c0_i32_0 : i32
    scf.if %2 {
      %cst_8 = arith.constant 0.000000e+00 : f32
      %9 = vector.broadcast %cst_8 : f32 to vector<1x256xf32>
      %c0_9 = arith.constant 0 : index
      %c0_10 = arith.constant 0 : index
      %10 = vector.load %arg4[%c0_9, %c0_10] : memref<1x256xf32, #tpu.memory_space<vmem>>, vector<1x256xf32>
      tpu.vector_store %arg4[%c0_9, %c0_10], %9 {strides = array<i32>} : memref<1x256xf32, #tpu.memory_space<vmem>>, vector<1x256xf32>,
    } else {
    }
    %c0 = arith.constant 0 : index
    %c0_1 = arith.constant 0 : index
    %3 = vector.load %arg4[%c0, %c0_1] : memref<1x256xf32, #tpu.memory_space<vmem>>, vector<1x256xf32>
    %c0_2 = arith.constant 0 : index
    %c0_3 = arith.constant 0 : index
    %4 = vector.load %arg2[%c0_2, %c0_3] : memref<1x1024xf32, #tpu.memory_space<vmem>>, vector<1x1024xf32>
    %c0_4 = arith.constant 0 : index
    %c0_5 = arith.constant 0 : index
    %5 = vector.load %arg3[%c0_4, %c0_5] : memref<256x1024xf32, #tpu.memory_space<vmem>>, vector<256x1024xf32>
    %cst = arith.constant dense<0.000000e+00> : vector<1x256xf32>
    %6 = tpu.matmul %4, %5, %cst {dimension_numbers = #tpu.dot_dimension_numbers<[1], [1], [0], [0], [0, 0, 1, 0], [], []>} : vector<1x1024xf32>, vector<256x1024xf32>, vector<1x256xf32> -> vector<1x256xf32>
    %7 = arith.addf %3, %6 : vector<1x256xf32>
    %c0_6 = arith.constant 0 : index
    %c0_7 = arith.constant 0 : index
    %8 = vector.load %arg4[%c0_6, %c0_7] : memref<1x256xf32, #tpu.memory_space<vmem>>, vector<1x256xf32>
    tpu.vector_store %arg4[%c0_6, %c0_7], %7 {strides = array<i32>} : memref<1x256xf32, #tpu.memory_space<vmem>>, vector<1x256xf32>,
    return
  }
  func.func @transform_0(%arg0: i32, %arg1: i32) -> (i32, i32) {
    %c0_i32 = arith.constant 0 : i32
    %c0_i32_0 = arith.constant 0 : i32
    return %c0_i32, %arg1 : i32, i32
  }
  func.func @transform_1(%arg0: i32, %arg1: i32) -> (i32, i32) {
    %c0_i32 = arith.constant 0 : i32
    return %arg0, %arg1 : i32, i32
  }
  func.func @transform_2(%arg0: i32, %arg1: i32) -> (i32, i32) {
    %c0_i32 = arith.constant 0 : i32
    %c0_i32_0 = arith.constant 0 : i32
    return %c0_i32, %arg0 : i32, i32
  }
}

</mosaic_0001>

<bundles_post_ra>
// kernel: tpu_custom_call.1
= control target key start
LH: loop header
LB: loop body
LE: loop exit
PB: predicated region body
PF: predicated region fallthrough
CT: control target
= control target key end

     0   :  { %s2250_s0 = inlined_call_operand.hbm [shape: f32[1,2048], index: 0, kind: input, shape index: {}]   ;;  %s2251_s1 = inlined_call_operand.hbm [shape: f32[512,2048], index: 1, kind: input, shape index: {}]   ;;  %s2252_s2 = inlined_call_operand.hbm [shape: f32[1,512], index: 2, kind: output, shape index: {}]  }
   0x1   :  { %2260 = sst [smem:[#allocation18_spill]] %s2250_s0 }
   0x2   :  { %7 = vsyncpa [#allocation3], 0 }
   0x3   :  { %9 = vsyncpa [#allocation3 + $0x1], 0 }
   0x4   :  { %10 = vsyncpa [#allocation6], 0 }
   0x5   :  { %12 = vsyncpa [#allocation6 + $0x1], 0 }
   0x6   :  { %13 = vsyncpa [#allocation4], 0 }
   0x7   :  { %15 = vsyncpa [#allocation4 + $0x1], 0  ;;  %s1617_s9 = smov 0   ;;  %s1619_s10 = smov 0  }
   0x8   :  { %s1621_s11 = smov 0   ;;  %s1623_s12 = smov 0  }
   0x9   :  { %s1625_s13 = smov 0   ;;  %s1627_s14 = smov 0  }
   0xa   :  { %s1629_s15 = smov 0   ;;  %s1631_s16 = smov 0  }
   0xb   :  { %s1633_s17 = smov 0   ;;  %s1635_s18 = smov 0  }
   0xc   :  { %s1637_s19 = smov 0   ;;  %s1639_s20 = smov 0  }
   0xd   :  { %s1641_s21 = smov 0   ;;  %s1643_s22 = smov 0  }
   0xe LB: > { %2261 = sst [smem:[#allocation11_spill]] %s1572_s17  ;;  %s959_s23 = sadd.s32 4294967295, %s1592_s22   ;;  %s1592_s22 = sphi %s1643_s22, %s21_s22   ;;  %s1588_s21 = sphi %s1641_s21, %s2292_s21   ;;  %s1584_s20 = sphi %s1639_s20, %s2304_s20   ;;  %s1580_s19 = sphi %s1637_s19, %s2290_s19   ;;  %s1576_s18 = sphi %s1635_s18, %s2303_s18   ;;  %s1572_s17 = sphi %s1633_s17, %s2302_s17   ;;  %s1568_s16 = sphi %s1631_s16, %s2301_s16   ;;  %s1564_s15 = sphi %s1629_s15, %s2300_s15   ;;  %s1560_s14 = sphi %s1627_s14, %s2299_s14   ;;  %s1556_s13 = sphi %s1625_s13, %s2298_s13   ;;  %s1552_s12 = sphi %s1623_s12, %s2297_s12   ;;  %s1548_s11 = sphi %s1621_s11, %s2296_s11   ;;  %s1544_s10 = sphi %s1619_s10, %s2295_s10   ;;  %s1540_s9 = sphi %s1617_s9, %s2294_s9  }
   0xf   : > { %2262 = sst [smem:[#allocation12_spill]] %s1588_s21  ;;  %s960_s24 = sadd.s32 4294967294, %s1592_s22  }
  0x10   : > { %s30_s25 = sadd.s32 1, %s1584_s20  ;;  %s33_s26 = sadd.s32 1, %s1588_s21 }
  0x11   : > { %p31_p0 = scmp.ge.s32.totalorder %s30_s25, 2  ;;  %s40_s27 = sadd.s32 1, %s1572_s17 }
  0x12   : > { %p47_p1 = scmp.ne.s32.totalorder %s1572_s17, %s1568_s16  ;;  %p48_p2 = scmp.eq.s32.totalorder %s1592_s22, 0 }
  0x13   : > { %s2306_s25 = smov (%p31_p0, %s30_s25), 0  ;;  %s2308_s26 = smov (!%p31_p0, %s33_s26), %s1588_s21 }
  0x14   : > { %2263 = sst [smem:[#allocation13_spill]] %s2306_s25  ;;  %s37_s28 = ssub.s32 %s1584_s20, %s2306_s25 }
  0x15   : > { %p1700_p3 = por %p48_p2, %p47_p1  ;;  %p35_p4 = scmp.ge.s32.totalorder %s2308_s26, 2 }
  0x16   : > { %p38_p5 = scmp.eq.s32.totalorder %s37_s28, 0  ;;  %p53_p6 = scmp.ne.s32.totalorder %s1568_s16, %s1564_s15 }
  0x17   : > { %p1707_p7 = scmp.eq.s32.totalorder %s959_s23, 0  ;;  %s2310_s26 = smov (%p35_p4, %s2308_s26), 0 }
  0x18   : > { %2266 = sst [smem:[#allocation14_spill]] %s2310_s26  ;;  %s63_s5 = ssub.s32 %s1588_s21, %s2310_s26 }
  0x19   : > { %s1714_s3 = scalar_select %p38_p5, %s1572_s17, %s40_s27  }
  0x1a   : > { %p1718_p8 = por %p1707_p7, %p53_p6  ;;  %s65_s6 = sor.u32 %s63_s5, %s37_s28 }
  0x1b   : > { %2267 = sst [smem:[#allocation15_spill]] %s1714_s3  ;;  %s68_s7 = sadd.s32 1, %s1560_s14 }
  0x1c   : > { %s2268_s4 = scalar_select %p1718_p8, 1, 0 }
  0x1d   : > { %p66_p9 = scmp.eq.s32.totalorder %s65_s6, 0  ;;  %p75_p10 = scmp.ne.s32.totalorder %s1560_s14, %s1556_s13 }
  0x1e   : > { %p81_p11 = scmp.ne.s32.totalorder %s1556_s13, %s1552_s12  ;;  %p92_p12 = scmp.eq.s32.totalorder %s63_s5, 0 }
  0x1f   : > { %s1730_s8 = scalar_select %p66_p9, %s1560_s14, %s68_s7  }
  0x20   : > { %p1734_p13 = por %p75_p10, %p48_p2  ;;  %p1740_p0 = por %p81_p11, %p1707_p7 }
  0x21   : > { %2269 = sst [smem:[#allocation16_spill]] %s1730_s8  ;;  %s94_s28 = sadd.s32 1, %s1548_s11 }
  0x22   : > { %s2271_s27 = scalar_select %p1740_p0, 1, 0 }
  0x23   : > { %p104_p1 = scmp.ne.s32.totalorder %s1548_s11, %s1544_s10  ;;  %p105_p4 = scmp.eq.s32.totalorder %s959_s23, 3 }
  0x24   : > { %s1748_s6 = scalar_select %p92_p12, %s1548_s11, %s94_s28  }
  0x25   : > { %p110_p5 = scmp.ne.s32.totalorder %s1544_s10, %s1540_s9  ;;  %p111_p2 = scmp.eq.s32.totalorder %s960_s24, 3 }
  0x26   : > { %2272 = sst [smem:[#allocation17_spill]] %s1748_s6  ;;  %p1756_p6 = por %p105_p4, %p104_p1 }
  0x27   : > { %p1263_p7 = scmp.lt.s32.totalorder %s1592_s22, 4  ;;  %p1761_p9 = por %p111_p2, %p110_p5 }
  0x28   : > { %s2273_s12 = scalar_select %p1756_p6, 1, 0 }
  0x29   : > { %s2274_s30 = scalar_select %p1761_p9, 1, 0 }
  0x2a   : > { %s131_s5 = sand.u32 1, %s1572_s17   ;;  %s981_s28 = sshll.u32 %s1584_s20, 7 }
  0x2b   : > { %s963_s7 = sshll.u32 %s131_s5, 3  ;;  %s2275_s0 = sld [smem:[#allocation18_spill]] }
  0x2c   : > { %s135_s24 = scalar_lea.vmem [#allocation2], %s963_s7  ;;  %p1776_p10 = pnand %p1263_p7, %p1700_p3 }
  0x2d   : > { %s143_s3 = sshll.u32 %s135_s24, 4  ;;  %p1783_p11 = pnand %p1263_p7, %p1734_p13  ;;  %s1772_s3 = int_to_ptr.vmem [resolvable:$true] %s143_s3 }
  0x2e   : > { %s132_s26 = scalar_lea.sflag [#allocation3], %s131_s5  ;;  %p1384_p4 = pneg %p1776_p10 }
  0x31   : > { %s1770_s23 = scalar_lea.hbm %s2275_s0, %s981_s28  ;;  %s1387_s24 = scalar_lea.hbm %s2275_s0, 256 }
  0x32   : > { %s1382_s7 = scalar_lea.hbm %s1770_s23, 128  ;;  %p1388_p13 = scmp.lt.u32.totalorder %s1770_s23, %s2275_s0 }
  0x33   : > { %p1383_p1 = scmp.ne.s32.totalorder %s1770_s23, %s1382_s7  ;;  %p1389_p2 = scmp.lt.u32.totalorder %s1387_s24, %s1382_s7 }
  0x34   : > { %p1391_p12 = scmp.lt.u32.totalorder %s1382_s7, %s1770_s23 }
  0x35   : > { %p1385_p3 = pnand %p1384_p4, %p1383_p1  ;;  %p1390_p7 = por %p1389_p2, %p1388_p13 }
  0x37   : > { %p1386_p5 = pneg %p1385_p3  ;;  %p1392_p9 = por %p1391_p12, %p1390_p7 }
  0x39   : > { %p1393_p6 = pnand %p1392_p9, %p1386_p5 }
  0x3b   : > { %1396 = shalt.err (!%p1393_p6)
}
  0x3c   : > { %s1397_s5 = scalar_lea.vmem %s1772_s3, 128  ;;  %s1594_s29 = smov [#allocation2]  }
  0x3d   : > { %p1398_p1 = scmp.ne.s32.totalorder %s1772_s3, %s1397_s5  ;;  %s1402_s28 = sshll.u32 %s1594_s29, 4  ;;  %s1403_s28 = int_to_ptr.vmem [resolvable:$false] %s1402_s28 }
  0x3e   : > { %s1404_s17 = scalar_lea.vmem %s1403_s28, 256  ;;  %p1405_p8 = scmp.lt.s32.totalorder %s1772_s3, %s1403_s28 }
  0x3f   : > { %p1400_p3 = pnand %p1398_p1, %p1384_p4  ;;  %p1406_p13 = scmp.lt.s32.totalorder %s1404_s17, %s1397_s5 }
  0x41   : > { %p1401_p0 = pneg %p1400_p3  ;;  %p1407_p2 = por %p1406_p13, %p1405_p8 }
  0x43   : > { %p1408_p12 = pnand %p1407_p2, %p1401_p0 }
  0x45   : > { %1411 = shalt.err (!%p1408_p12)
}
  0x46   : > { %1255 = dma.hbm_to_vmem [thread:$0]  (!%p1776_p10), %s1770_s23, 128, %s1772_s3, %s132_s26  }
  0x47   : > { %p172_p6 = scmp.lt.s32.totalorder %s1592_s22, 5  ;;  %s150_s7 = sand.u32 1, %s1560_s14  }
  0x48   : > { %s982_s24 = sshll.u32 %s1588_s21, 9  ;;  %p2278_p9 = scmp.ge.s32.totalorder %s1592_s22, 1 }
  0x49   : > { %s966_s5 = sshll.u32 %s150_s7, 11  ;;  %s2280_s8 = sshll.u32 %s1584_s20, 3 }
  0x4a   : > { %p1818_p4 = pnand %p2278_p9, %p172_p6  ;;  %s161_s29 = sadd.s32 %s982_s24, %s2280_s8 }
  0x4b   : > { %s970_s28 = sshll.u32 %s161_s29, 7  ;;  %s154_s3 = scalar_lea.vmem [#allocation5], %s966_s5 }
  0x4c   : > { %s1827_s6 = scalar_lea.hbm %s2251_s1, %s970_s28  ;;  %s164_s23 = sshll.u32 %s154_s3, 4  ;;  %s1829_s23 = int_to_ptr.vmem [resolvable:$true] %s164_s23 }
  0x4d   : > { %s1831_s26 = scalar_lea.sflag [#allocation6], %s150_s7  ;;  %s1412_s21 = scalar_lea.hbm %s1827_s6, 32768 }
  0x4e   : > { %p1413_p8 = scmp.ne.s32.totalorder %s1827_s6, %s1412_s21  ;;  %p1414_p0 = pneg %p1783_p11 }
  0x4f   : > { %s1417_s8 = scalar_lea.hbm %s2251_s1, 131072  ;;  %p1418_p7 = scmp.lt.u32.totalorder %s1827_s6, %s2251_s1 }
  0x50   : > { %p1415_p10 = pnand %p1414_p0, %p1413_p8  ;;  %p1419_p1 = scmp.lt.u32.totalorder %s1417_s8, %s1412_s21 }
  0x51   : > { %p1421_p13 = scmp.lt.u32.totalorder %s1412_s21, %s1827_s6 }
  0x52   : > { %p1416_p5 = pneg %p1415_p10  ;;  %p1420_p3 = por %p1419_p1, %p1418_p7 }
  0x54   : > { %p1422_p2 = por %p1421_p13, %p1420_p3 }
  0x56   : > { %p1423_p12 = pnand %p1422_p2, %p1416_p5 }
  0x58   : > { %1426 = shalt.err (!%p1423_p12)
}
  0x59   : > { %s1427_s7 = scalar_lea.vmem %s1829_s23, 32768  ;;  %s1595_s5 = smov [#allocation5]  }
  0x5a   : > { %p1428_p6 = scmp.ne.s32.totalorder %s1829_s23, %s1427_s7  ;;  %s1432_s17 = sshll.u32 %s1595_s5, 4  ;;  %s1433_s17 = int_to_ptr.vmem [resolvable:$false] %s1432_s17 }
  0x5b   : > { %s1434_s3 = scalar_lea.vmem %s1433_s17, 65536  ;;  %p1435_p10 = scmp.lt.s32.totalorder %s1829_s23, %s1433_s17 }
  0x5c   : > { %p1430_p9 = pnand %p1428_p6, %p1414_p0  ;;  %p1436_p7 = scmp.lt.s32.totalorder %s1434_s3, %s1427_s7 }
  0x5e   : > { %p1431_p8 = pneg %p1430_p9  ;;  %p1437_p1 = por %p1436_p7, %p1435_p10 }
  0x60   : > { %p1438_p3 = pnand %p1437_p1, %p1431_p8 }
  0x62   : > { %1441 = shalt.err (!%p1438_p3)
}
  0x63   : > { %s1596_s21 = smov 2048   ;;  %s1597_s0 = smov 1024  }
  0x64   : > { %s1598_s24 = smov 64   ;;  %176 = sbr.rel (%p1818_p4) target bundleno = 620 (0x26c), region = 28 }
  0x65   : > { %1258 = dma.hbm_to_vmem [thread:$0]  (!%p1783_p11), %s1827_s6, 32768, %s1829_s23, %s1831_s26, %s1596_s21, %s1597_s0, %s1598_s24  }
  0x66   : > { %s178_s8 = sand.u32 (!%p1818_p4), 1, %s1568_s16   ;;  %p2281_p0 = scmp.ne.s32.totalorder (!%p1818_p4), %s2268_s4, 0 }
  0x67   : > { %s1862_s29 = sshll.u32 (!%p1818_p4), %s178_s8, 3  ;;  %s179_s28 = scalar_lea.sflag (!%p1818_p4), [#allocation3], %s178_s8 }
  0x68   : > { %s182_s7 = scalar_lea.vmem (!%p1818_p4), [#allocation2], %s1862_s29 }
  0x6b   : > { %1527 = dma.done.wait (%p2281_p0), %s179_s28, 128  }
  0x6c   : > { %1529 = vsyncadd (%p2281_p0), %s179_s28, 4294967168  ;;  %s187_s25 = sand.u32 1, %s1556_s13   ;;  %p2282_p11 = scmp.ne.s32.totalorder %s2271_s27, 0 }
  0x6d   : > { %s973_s6 = sshll.u32 %s187_s25, 11  ;;  %s188_s23 = scalar_lea.sflag [#allocation6], %s187_s25 }
  0x6e   : > { %s1870_s15 = scalar_lea.vmem [#allocation5], %s973_s6 }
  0x6f   : > { %1531 = dma.done.wait (%p2282_p11), %s188_s23, 32768  }
  0x70   : > { %1533 = vsyncadd (%p2282_p11), %s188_s23, 4294934528  ;;  %s214_s26 = sand.u32 1, %s1544_s10   ;;  %p975_p4 = scmp.ne.s32.totalorder %s1576_s18, 0 }
  0x71   : > { %s974_s5 = sshll.u32 %s214_s26, 1  ;;  %v225_v0 = vlaneseq (!%p975_p4)  ;;  %v1599_v1 = vmov (!%p975_p4), 0.0  }
  0x72   : > { %s1879_s17 = scalar_lea.vmem [#allocation7], %s974_s5  ;;  %224 = sbr.rel (%p975_p4) target bundleno = 121 (0x79), region = 40 }
  0x73   : > { %vm227_vm0 = vcmp.lt.s32.totalorder (!%p975_p4), %v225_v0, 256 }
  0x74   : > { %229 = vst.msk [vmem:[%s1879_s17] sm:$0x3] (!%p975_p4), %vm227_vm0, %v1599_v1 }
  0x79 PF: > { %v233_v2 = vld [vmem:[%s1870_s15 + $0x8] sm:$0xff]  ;;  %v232_v7 = vld [vmem:[%s1870_s15] sm:$0xff]  ;;  %v489_v0 = vlaneseq  ;;  %s983_s18 = sshll.u32 %s1580_s19, 5  ;;  %s852_s4 = sshll.u32 %s1879_s17, 4  ;;  %s2172_s4 = int_to_ptr.vmem [resolvable:$true] %s852_s4 }
  0x7a   : > { %v241_v3 = vld [vmem:[%s1870_s15 + $0x48] sm:$0xff]  ;;  %v240_v8 = vld [vmem:[%s1870_s15 + $0x40] sm:$0xff]  ;;  %s2170_s21 = scalar_lea.hbm %s2252_s2, %s983_s18  ;;  %s838_s0 = scalar_lea.sflag [#allocation4], %s214_s26 }
  0x7b   : > { %v237_v4 = vld [vmem:[%s1870_s15 + $0x28] sm:$0xff]  ;;  %v984_v5 = vpack.c.bf16 %v241_v3, %v233_v2  ;;  %v986_v10 = vpack.c.bf16 %v240_v8, %v232_v7  ;;  %v236_v11 = vld [vmem:[%s1870_s15 + $0x20] sm:$0xff]  ;;  %vm834_vm1 = vcmp.lt.s32.totalorder %v489_v0, 256  ;;  %s1442_s24 = scalar_lea.vmem %s2172_s4, 32  ;;  %p2283_p13 = scmp.ne.s32.totalorder %s2273_s12, 0 }
  0x7c   : > { %v245_v6 = vld [vmem:[%s1870_s15 + $0x68] sm:$0xff]  ;;  %v244_v12 = vld [vmem:[%s1870_s15 + $0x60] sm:$0xff]  ;;  %p1443_p5 = scmp.ne.s32.totalorder %s2172_s4, %s1442_s24  ;;  %s1601_s19 = smov [#allocation7]  }
  0x7d   : > { %v1112_v9 = vpack.c.bf16 %v245_v6, %v237_v4  ;;  %v249_v13 = vld [vmem:[%s1870_s15 + $0x88] sm:$0xff]  ;;  %985 = vmatprep.subr.bf16.mxu1 %v984_v5  ;;  %v1114_v14 = vpack.c.bf16 %v244_v12, %v236_v11  ;;  %v248_v20 = vld [vmem:[%s1870_s15 + $0x80] sm:$0xff]  ;;  %v1928_v5 = vshrl.u32 %v489_v0, 7  ;;  %s1446_s8 = sshll.u32 %s1601_s19, 4  ;;  %s1447_s8 = int_to_ptr.vmem [resolvable:$false] %s1446_s8 }
  0x7e   : > { %v257_v15 = vld [vmem:[%s1870_s15 + $0xc8] sm:$0xff]  ;;  %987 = vmatpush1.bf16.xpose.msra.mxu1 %v986_v10  ;;  %v256_v21 = vld [vmem:[%s1870_s15 + $0xc0] sm:$0xff]  ;;  %p1444_p2 = pnand %p1443_p5, %p2283_p13  ;;  %s1448_s29 = scalar_lea.vmem %s1447_s8, 64 }
  0x7f   : > { %v253_v16 = vld [vmem:[%s1870_s15 + $0xa8] sm:$0xff]  ;;  %1113 = vmatprep.subr.bf16.mxu0 %v1112_v9  ;;  %v988_v18 = vpack.c.bf16 %v257_v15, %v249_v13  ;;  %v252_v22 = vld [vmem:[%s1870_s15 + $0xa0] sm:$0xff]  ;;  %v990_v28 = vpack.c.bf16 %v256_v21, %v248_v20  ;;  %v511_v15 = vsub.s32 5, %v1928_v5  ;;  %v1942_v20 = vld [vmem:[%s182_s7] sm:$0xff]  ;;  %p1449_p6 = scmp.lt.s32.totalorder %s2172_s4, %s1447_s8  ;;  %p1450_p9 = scmp.lt.s32.totalorder %s1448_s29, %s1442_s24 }
  0x80   : > { %v261_v17 = vld [vmem:[%s1870_s15 + $0xe8] sm:$0xff]  ;;  %1115 = vmatpush1.bf16.xpose.msra.mxu0 %v1114_v14  ;;  %v260_v23 = vld [vmem:[%s1870_s15 + $0xe0] sm:$0xff]  ;;  %v495_v14 = vsub.s32 1, %v1928_v5  ;;  %p1445_p12 = pneg %p1444_p2 }
  0x81   : > { %v1116_v19 = vpack.c.bf16 %v261_v17, %v253_v16  ;;  %989 = vmatprep.subr.bf16.mxu1 %v988_v18  ;;  %v265_v24 = vld [vmem:[%s1870_s15 + $0x108] sm:$0xff]  ;;  %v1118_v29 = vpack.c.bf16 %v260_v23, %v252_v22  ;;  %v264_v32 = vld [vmem:[%s1870_s15 + $0x100] sm:$0xff]  ;;  %v512_v22 = vrot.slane %v1942_v20, %v511_v15  ;;  %p1451_p8 = por %p1450_p9, %p1449_p6 }
  0x82   : > { %v273_v25 = vld [vmem:[%s1870_s15 + $0x148] sm:$0xff]  ;;  %v272_v33 = vld [vmem:[%s1870_s15 + $0x140] sm:$0xff]  ;;  %v496_v21 = vrot.slane %v1942_v20, %v495_v14 }
  0x83   : > { %1117 = vmatprep.subr.bf16.mxu0 %v1116_v19  ;;  %v269_v26 = vld [vmem:[%s1870_s15 + $0x128] sm:$0xff]  ;;  %v992_v30 = vpack.c.bf16 %v273_v25, %v265_v24  ;;  %v268_v34 = vld [vmem:[%s1870_s15 + $0x120] sm:$0xff]  ;;  %v994_v40 = vpack.c.bf16 %v272_v33, %v264_v32  ;;  %735 = vmatprep.mubr.f32.mxu0 %v512_v22  ;;  %p1452_p10 = pnand %p1451_p8, %p1445_p12 }
  0x84   : > { %v277_v27 = vld [vmem:[%s1870_s15 + $0x168] sm:$0xff]  ;;  %v276_v35 = vld [vmem:[%s1870_s15 + $0x160] sm:$0xff]  ;;  %593 = vmatprep.mubr.f32.mxu1 %v496_v21 }
  0x85   : > { %v1120_v31 = vpack.c.bf16 %v277_v27, %v269_v26  ;;  %v281_v36 = vld [vmem:[%s1870_s15 + $0x188] sm:$0xff]  ;;  %v1122_v41 = vpack.c.bf16 %v276_v35, %v268_v34  ;;  %v280_v44 = vld [vmem:[%s1870_s15 + $0x180] sm:$0xff] }
  0x86   : > { %991 = vmatpush1.bf16.xpose.msra.mxu1 %v990_v28  ;;  %v289_v37 = vld [vmem:[%s1870_s15 + $0x1c8] sm:$0xff]  ;;  %v288_v45 = vld [vmem:[%s1870_s15 + $0x1c0] sm:$0xff] }
  0x87   : > { %993 = vmatprep.subr.bf16.mxu1 %v992_v30  ;;  %v285_v38 = vld [vmem:[%s1870_s15 + $0x1a8] sm:$0xff]  ;;  %v996_v42 = vpack.c.bf16 %v289_v37, %v281_v36  ;;  %v284_v46 = vld [vmem:[%s1870_s15 + $0x1a0] sm:$0xff]  ;;  %v998_v52 = vpack.c.bf16 %v288_v45, %v280_v44 }
  0x88   : > { %1119 = vmatpush1.bf16.xpose.msra.mxu0 %v1118_v29  ;;  %v293_v39 = vld [vmem:[%s1870_s15 + $0x1e8] sm:$0xff]  ;;  %v292_v47 = vld [vmem:[%s1870_s15 + $0x1e0] sm:$0xff] }
  0x89   : > { %1121 = vmatprep.subr.bf16.mxu0 %v1120_v31  ;;  %v1124_v43 = vpack.c.bf16 %v293_v39, %v285_v38  ;;  %v297_v48 = vld [vmem:[%s1870_s15 + $0x208] sm:$0xff]  ;;  %v1126_v53 = vpack.c.bf16 %v292_v47, %v284_v46  ;;  %v296_v56 = vld [vmem:[%s1870_s15 + $0x200] sm:$0xff] }
  0x8a   : > { %v305_v49 = vld [vmem:[%s1870_s15 + $0x248] sm:$0xff]  ;;  %v304_v57 = vld [vmem:[%s1870_s15 + $0x240] sm:$0xff] }
  0x8b   : > { %v301_v50 = vld [vmem:[%s1870_s15 + $0x228] sm:$0xff]  ;;  %v1000_v54 = vpack.c.bf16 %v305_v49, %v297_v48  ;;  %v300_v58 = vld [vmem:[%s1870_s15 + $0x220] sm:$0xff]  ;;  %v1002_v1 = vpack.c.bf16 %v304_v57, %v296_v56 }
  0x8c   : > { %v309_v51 = vld [vmem:[%s1870_s15 + $0x268] sm:$0xff]  ;;  %v308_v59 = vld [vmem:[%s1870_s15 + $0x260] sm:$0xff] }
  0x8d   : > { %v1128_v55 = vpack.c.bf16 %v309_v51, %v301_v50  ;;  %v313_v60 = vld [vmem:[%s1870_s15 + $0x288] sm:$0xff]  ;;  %v1130_v2 = vpack.c.bf16 %v308_v59, %v300_v58  ;;  %v312_v6 = vld [vmem:[%s1870_s15 + $0x280] sm:$0xff] }
  0x8e   : > { %995 = vmatpush1.bf16.xpose.msra.mxu1 %v994_v40  ;;  %v321_v61 = vld [vmem:[%s1870_s15 + $0x2c8] sm:$0xff]  ;;  %v320_v7 = vld [vmem:[%s1870_s15 + $0x2c0] sm:$0xff] }
  0x8f   : > { %997 = vmatprep.subr.bf16.mxu1 %v996_v42  ;;  %v317_v62 = vld [vmem:[%s1870_s15 + $0x2a8] sm:$0xff]  ;;  %v1004_v3 = vpack.c.bf16 %v321_v61, %v313_v60  ;;  %v316_v8 = vld [vmem:[%s1870_s15 + $0x2a0] sm:$0xff]  ;;  %v1006_v16 = vpack.c.bf16 %v320_v7, %v312_v6 }
  0x90   : > { %1123 = vmatpush1.bf16.xpose.msra.mxu0 %v1122_v41  ;;  %v325_v63 = vld [vmem:[%s1870_s15 + $0x2e8] sm:$0xff]  ;;  %v324_v9 = vld [vmem:[%s1870_s15 + $0x2e0] sm:$0xff] }
  0x91   : > { %1125 = vmatprep.subr.bf16.mxu0 %v1124_v43  ;;  %v1132_v4 = vpack.c.bf16 %v325_v63, %v317_v62  ;;  %v329_v10 = vld [vmem:[%s1870_s15 + $0x308] sm:$0xff]  ;;  %v1134_v17 = vpack.c.bf16 %v324_v9, %v316_v8  ;;  %v328_v23 = vld [vmem:[%s1870_s15 + $0x300] sm:$0xff] }
  0x92   : > { %v337_v11 = vld [vmem:[%s1870_s15 + $0x348] sm:$0xff]  ;;  %v336_v24 = vld [vmem:[%s1870_s15 + $0x340] sm:$0xff] }
  0x93   : > { %v333_v12 = vld [vmem:[%s1870_s15 + $0x328] sm:$0xff]  ;;  %v1008_v18 = vpack.c.bf16 %v337_v11, %v329_v10  ;;  %v332_v25 = vld [vmem:[%s1870_s15 + $0x320] sm:$0xff]  ;;  %v1010_v31 = vpack.c.bf16 %v336_v24, %v328_v23 }
  0x94   : > { %v341_v13 = vld [vmem:[%s1870_s15 + $0x368] sm:$0xff]  ;;  %v340_v26 = vld [vmem:[%s1870_s15 + $0x360] sm:$0xff] }
  0x95   : > { %v1136_v19 = vpack.c.bf16 %v341_v13, %v333_v12  ;;  %v345_v27 = vld [vmem:[%s1870_s15 + $0x388] sm:$0xff]  ;;  %v1138_v32 = vpack.c.bf16 %v340_v26, %v332_v25  ;;  %v344_v35 = vld [vmem:[%s1870_s15 + $0x380] sm:$0xff] }
  0x96   : > { %999 = vmatpush1.bf16.xpose.msra.mxu1 %v998_v52  ;;  %v353_v28 = vld [vmem:[%s1870_s15 + $0x3c8] sm:$0xff]  ;;  %v352_v36 = vld [vmem:[%s1870_s15 + $0x3c0] sm:$0xff] }
  0x97   : > { %1001 = vmatprep.subr.bf16.mxu1 %v1000_v54  ;;  %v349_v29 = vld [vmem:[%s1870_s15 + $0x3a8] sm:$0xff]  ;;  %v1012_v33 = vpack.c.bf16 %v353_v28, %v345_v27  ;;  %v348_v37 = vld [vmem:[%s1870_s15 + $0x3a0] sm:$0xff]  ;;  %v1014_v43 = vpack.c.bf16 %v352_v36, %v344_v35 }
  0x98   : > { %1127 = vmatpush1.bf16.xpose.msra.mxu0 %v1126_v53  ;;  %v357_v30 = vld [vmem:[%s1870_s15 + $0x3e8] sm:$0xff]  ;;  %v356_v38 = vld [vmem:[%s1870_s15 + $0x3e0] sm:$0xff] }
  0x99   : > { %1129 = vmatprep.subr.bf16.mxu0 %v1128_v55  ;;  %v1140_v34 = vpack.c.bf16 %v357_v30, %v349_v29  ;;  %v361_v39 = vld [vmem:[%s1870_s15 + $0x408] sm:$0xff]  ;;  %v1142_v44 = vpack.c.bf16 %v356_v38, %v348_v37  ;;  %v360_v47 = vld [vmem:[%s1870_s15 + $0x400] sm:$0xff] }
  0x9a   : > { %v369_v40 = vld [vmem:[%s1870_s15 + $0x448] sm:$0xff]  ;;  %v368_v48 = vld [vmem:[%s1870_s15 + $0x440] sm:$0xff] }
  0x9b   : > { %v365_v41 = vld [vmem:[%s1870_s15 + $0x428] sm:$0xff]  ;;  %v1016_v45 = vpack.c.bf16 %v369_v40, %v361_v39  ;;  %v364_v49 = vld [vmem:[%s1870_s15 + $0x420] sm:$0xff]  ;;  %v1018_v55 = vpack.c.bf16 %v368_v48, %v360_v47 }
  0x9c   : > { %v373_v42 = vld [vmem:[%s1870_s15 + $0x468] sm:$0xff]  ;;  %v372_v50 = vld [vmem:[%s1870_s15 + $0x460] sm:$0xff] }
  0x9d   : > { %v1144_v46 = vpack.c.bf16 %v373_v42, %v365_v41  ;;  %v377_v51 = vld [vmem:[%s1870_s15 + $0x488] sm:$0xff]  ;;  %v1146_v56 = vpack.c.bf16 %v372_v50, %v364_v49  ;;  %v376_v59 = vld [vmem:[%s1870_s15 + $0x480] sm:$0xff] }
  0x9e   : > { %1003 = vmatpush1.bf16.xpose.msra.mxu1 %v1002_v1  ;;  %v385_v52 = vld [vmem:[%s1870_s15 + $0x4c8] sm:$0xff]  ;;  %v384_v60 = vld [vmem:[%s1870_s15 + $0x4c0] sm:$0xff] }
  0x9f   : > { %1005 = vmatprep.subr.bf16.mxu1 %v1004_v3  ;;  %v381_v53 = vld [vmem:[%s1870_s15 + $0x4a8] sm:$0xff]  ;;  %v1020_v57 = vpack.c.bf16 %v385_v52, %v377_v51  ;;  %v380_v61 = vld [vmem:[%s1870_s15 + $0x4a0] sm:$0xff] }
  0xa0   : > { %1131 = vmatpush1.bf16.xpose.msra.mxu0 %v1130_v2  ;;  %v389_v54 = vld [vmem:[%s1870_s15 + $0x4e8] sm:$0xff]  ;;  %v388_v62 = vld [vmem:[%s1870_s15 + $0x4e0] sm:$0xff] }
  0xa1   : > { %1133 = vmatprep.subr.bf16.mxu0 %v1132_v4  ;;  %v1148_v58 = vpack.c.bf16 %v389_v54, %v381_v53  ;;  %v393_v63 = vld [vmem:[%s1870_s15 + $0x508] sm:$0xff]  ;;  %v1022_v4 = vpack.c.bf16 %v384_v60, %v376_v59  ;;  %v1150_v6 = vpack.c.bf16 %v388_v62, %v380_v61  ;;  %v392_v9 = vld [vmem:[%s1870_s15 + $0x500] sm:$0xff] }
  0xa2   : > { %v401_v1 = vld [vmem:[%s1870_s15 + $0x548] sm:$0xff]  ;;  %v400_v10 = vld [vmem:[%s1870_s15 + $0x540] sm:$0xff] }
  0xa3   : > { %v397_v2 = vld [vmem:[%s1870_s15 + $0x528] sm:$0xff]  ;;  %v1024_v7 = vpack.c.bf16 %v401_v1, %v393_v63  ;;  %v396_v11 = vld [vmem:[%s1870_s15 + $0x520] sm:$0xff] }
  0xa4   : > { %v405_v3 = vld [vmem:[%s1870_s15 + $0x568] sm:$0xff]  ;;  %v404_v12 = vld [vmem:[%s1870_s15 + $0x560] sm:$0xff] }
  0xa5   : > { %v1152_v8 = vpack.c.bf16 %v405_v3, %v397_v2  ;;  %v409_v13 = vld [vmem:[%s1870_s15 + $0x588] sm:$0xff]  ;;  %v408_v22 = vld [vmem:[%s1870_s15 + $0x580] sm:$0xff] }
  0xa6   : > { %1007 = vmatpush1.bf16.xpose.msra.mxu1 %v1006_v16  ;;  %v417_v14 = vld [vmem:[%s1870_s15 + $0x5c8] sm:$0xff]  ;;  %v416_v23 = vld [vmem:[%s1870_s15 + $0x5c0] sm:$0xff] }
  0xa7   : > { %1009 = vmatprep.subr.bf16.mxu1 %v1008_v18  ;;  %v413_v15 = vld [vmem:[%s1870_s15 + $0x5a8] sm:$0xff]  ;;  %v1154_v18 = vpack.c.bf16 %v404_v12, %v396_v11  ;;  %v412_v24 = vld [vmem:[%s1870_s15 + $0x5a0] sm:$0xff]  ;;  %v1030_v30 = vpack.c.bf16 %v416_v23, %v408_v22  ;;  %v235_v12 = vld [vmem:[%s1870_s15 + $0x18] sm:$0xff]  ;;  %v507_v22 = vsub.s32 4, %v1928_v5 }
  0xa8   : > { %1135 = vmatpush1.bf16.xpose.msra.mxu0 %v1134_v17  ;;  %v421_v16 = vld [vmem:[%s1870_s15 + $0x5e8] sm:$0xff]  ;;  %v1026_v17 = vpack.c.bf16 %v400_v10, %v392_v9  ;;  %v420_v25 = vld [vmem:[%s1870_s15 + $0x5e0] sm:$0xff]  ;;  %v234_v23 = vld [vmem:[%s1870_s15 + $0x10] sm:$0xff] }
  0xa9   : > { %1137 = vmatprep.subr.bf16.mxu0 %v1136_v19  ;;  %v1028_v19 = vpack.c.bf16 %v417_v14, %v409_v13  ;;  %v1156_v21 = vpack.c.bf16 %v421_v16, %v413_v15  ;;  %v425_v26 = vld [vmem:[%s1870_s15 + $0x608] sm:$0xff]  ;;  %v432_v35 = vld [vmem:[%s1870_s15 + $0x640] sm:$0xff]  ;;  %v243_v13 = vld [vmem:[%s1870_s15 + $0x58] sm:$0xff] }
  0xaa   : > { %v433_v27 = vld [vmem:[%s1870_s15 + $0x648] sm:$0xff]  ;;  %v428_v36 = vld [vmem:[%s1870_s15 + $0x620] sm:$0xff]  ;;  %v239_v14 = vld [vmem:[%s1870_s15 + $0x38] sm:$0xff] }
  0xab   : > { %v429_v28 = vld [vmem:[%s1870_s15 + $0x628] sm:$0xff]  ;;  %v436_v37 = vld [vmem:[%s1870_s15 + $0x660] sm:$0xff]  ;;  %v247_v15 = vld [vmem:[%s1870_s15 + $0x78] sm:$0xff] }
  0xac   : > { %v437_v29 = vld [vmem:[%s1870_s15 + $0x668] sm:$0xff]  ;;  %v448_v47 = vld [vmem:[%s1870_s15 + $0x6c0] sm:$0xff] }
  0xad   : > { %v441_v38 = vld [vmem:[%s1870_s15 + $0x688] sm:$0xff]  ;;  %v444_v48 = vld [vmem:[%s1870_s15 + $0x6a0] sm:$0xff] }
  0xae   : > { %1011 = vmatpush1.bf16.xpose.msra.mxu1 %v1010_v31  ;;  %v1158_v31 = vpack.c.bf16 %v420_v25, %v412_v24  ;;  %v449_v39 = vld [vmem:[%s1870_s15 + $0x6c8] sm:$0xff]  ;;  %v452_v49 = vld [vmem:[%s1870_s15 + $0x6e0] sm:$0xff]  ;;  %v242_v24 = vld [vmem:[%s1870_s15 + $0x50] sm:$0xff] }
  0xaf   : > { %1013 = vmatprep.subr.bf16.mxu1 %v1012_v33  ;;  %v1160_v33 = vpack.c.bf16 %v437_v29, %v429_v28  ;;  %v445_v40 = vld [vmem:[%s1870_s15 + $0x6a8] sm:$0xff]  ;;  %v464_v59 = vld [vmem:[%s1870_s15 + $0x740] sm:$0xff]  ;;  %v238_v25 = vld [vmem:[%s1870_s15 + $0x30] sm:$0xff]  ;;  %v503_v29 = vsub.s32 3, %v1928_v5 }
  0xb0   : > { %1139 = vmatpush1.bf16.xpose.msra.mxu0 %v1138_v32  ;;  %v1032_v32 = vpack.c.bf16 %v433_v27, %v425_v26  ;;  %v453_v41 = vld [vmem:[%s1870_s15 + $0x6e8] sm:$0xff]  ;;  %v460_v60 = vld [vmem:[%s1870_s15 + $0x720] sm:$0xff]  ;;  %v246_v26 = vld [vmem:[%s1870_s15 + $0x70] sm:$0xff] }
  0xb1   : > { %1141 = vmatprep.subr.bf16.mxu0 %v1140_v34  ;;  %v424_v34 = vld [vmem:[%s1870_s15 + $0x600] sm:$0xff]  ;;  %v457_v50 = vld [vmem:[%s1870_s15 + $0x708] sm:$0xff]  ;;  %v251_v27 = vld [vmem:[%s1870_s15 + $0x98] sm:$0xff] }
  0xb2   : > { %v1034_v42 = vpack.c.bf16 %v432_v35, %v424_v34  ;;  %v465_v51 = vld [vmem:[%s1870_s15 + $0x748] sm:$0xff]  ;;  %v468_v61 = vld [vmem:[%s1870_s15 + $0x760] sm:$0xff]  ;;  %v259_v28 = vld [vmem:[%s1870_s15 + $0xd8] sm:$0xff]  ;;  %v1050_v34 = vpack.c.bf16 %v242_v24, %v234_v23  ;;  %v508_v35 = vrot.slane %v1942_v20, %v507_v22 }
  0xb3   : > { %v461_v52 = vld [vmem:[%s1870_s15 + $0x728] sm:$0xff]  ;;  %v480_v9 = vld [vmem:[%s1870_s15 + $0x7c0] sm:$0xff]  ;;  %v319_v22 = vld [vmem:[%s1870_s15 + $0x2b8] sm:$0xff] }
  0xb4   : > { %v469_v53 = vld [vmem:[%s1870_s15 + $0x768] sm:$0xff]  ;;  %v476_v10 = vld [vmem:[%s1870_s15 + $0x7a0] sm:$0xff]  ;;  %v327_v23 = vld [vmem:[%s1870_s15 + $0x2f8] sm:$0xff] }
  0xb5   : > { %v473_v62 = vld [vmem:[%s1870_s15 + $0x788] sm:$0xff]  ;;  %v484_v11 = vld [vmem:[%s1870_s15 + $0x7e0] sm:$0xff] }
  0xb6   : > { %1015 = vmatpush1.bf16.xpose.msra.mxu1 %v1014_v43  ;;  %v1162_v43 = vpack.c.bf16 %v436_v37, %v428_v36  ;;  %v481_v63 = vld [vmem:[%s1870_s15 + $0x7c8] sm:$0xff]  ;;  %v1178_v36 = vpack.c.bf16 %v246_v26, %v238_v25  ;;  %v1052_v37 = vpack.c.bf16 %v259_v28, %v251_v27  ;;  %v1196_v27 = vpack.c.bf16 %v327_v23, %v319_v22  ;;  %v314_v28 = vld [vmem:[%s1870_s15 + $0x290] sm:$0xff]  ;;  %v407_v22 = vld [vmem:[%s1870_s15 + $0x578] sm:$0xff] }
  0xb7   : > { %1017 = vmatprep.subr.bf16.mxu1 %v1016_v45  ;;  %v1164_v45 = vpack.c.bf16 %v453_v41, %v445_v40  ;;  %v477_v1 = vld [vmem:[%s1870_s15 + $0x7a8] sm:$0xff]  ;;  %v250_v41 = vld [vmem:[%s1870_s15 + $0x90] sm:$0xff] }
  0xb8   : > { %1143 = vmatpush1.bf16.xpose.msra.mxu0 %v1142_v44  ;;  %v1036_v44 = vpack.c.bf16 %v449_v39, %v441_v38  ;;  %v485_v2 = vld [vmem:[%s1870_s15 + $0x7e8] sm:$0xff]  ;;  %v504_v39 = vrot.slane %v1942_v20, %v503_v29  ;;  %v322_v29 = vld [vmem:[%s1870_s15 + $0x2d0] sm:$0xff] }
  0xb9   : > { %1145 = vmatprep.subr.bf16.mxu0 %v1144_v46  ;;  %v440_v46 = vld [vmem:[%s1870_s15 + $0x680] sm:$0xff] }
  0xba   : > { %v1038_v54 = vpack.c.bf16 %v448_v47, %v440_v46  ;;  %v275_v46 = vld [vmem:[%s1870_s15 + $0x158] sm:$0xff] }
  0xbb   : > { %v271_v47 = vld [vmem:[%s1870_s15 + $0x138] sm:$0xff] }
  0xbe   : > { %1019 = vmatpush1.bf16.xpose.msra.mxu1 %v1018_v55  ;;  %v1166_v55 = vpack.c.bf16 %v452_v49, %v444_v48  ;;  %v279_v48 = vld [vmem:[%s1870_s15 + $0x178] sm:$0xff] }
  0xbf   : > { %1021 = vmatprep.subr.bf16.mxu1 %v1020_v57  ;;  %v1168_v57 = vpack.c.bf16 %v469_v53, %v461_v52  ;;  %v1184_v52 = vpack.c.bf16 %v279_v48, %v271_v47  ;;  %v266_v53 = vld [vmem:[%s1870_s15 + $0x110] sm:$0xff]  ;;  %v359_v47 = vld [vmem:[%s1870_s15 + $0x3f8] sm:$0xff] }
  0xc0   : > { %1147 = vmatpush1.bf16.xpose.msra.mxu0 %v1146_v56  ;;  %v1040_v56 = vpack.c.bf16 %v465_v51, %v457_v50 }
  0xc1   : > { %1149 = vmatprep.subr.bf16.mxu0 %v1148_v58  ;;  %v456_v58 = vld [vmem:[%s1870_s15 + $0x700] sm:$0xff] }
  0xc2   : > { %v1042_v3 = vpack.c.bf16 %v464_v59, %v456_v58  ;;  %v291_v58 = vld [vmem:[%s1870_s15 + $0x1d8] sm:$0xff] }
  0xc3   : > { %v287_v59 = vld [vmem:[%s1870_s15 + $0x1b8] sm:$0xff] }
  0xc6   : > { %1023 = vmatpush1.bf16.xpose.msra.mxu1 %v1022_v4  ;;  %v1170_v4 = vpack.c.bf16 %v468_v61, %v460_v60  ;;  %v295_v60 = vld [vmem:[%s1870_s15 + $0x1f8] sm:$0xff] }
  0xc7   : > { %1025 = vmatprep.subr.bf16.mxu1 %v1024_v7  ;;  %v1172_v7 = vpack.c.bf16 %v485_v2, %v477_v1  ;;  %v1188_v1 = vpack.c.bf16 %v295_v60, %v287_v59  ;;  %v282_v2 = vld [vmem:[%s1870_s15 + $0x190] sm:$0xff]  ;;  %v375_v59 = vld [vmem:[%s1870_s15 + $0x478] sm:$0xff] }
  0xc8   : > { %1151 = vmatpush1.bf16.xpose.msra.mxu0 %v1150_v6  ;;  %v1044_v6 = vpack.c.bf16 %v481_v63, %v473_v62 }
  0xc9   : > { %1153 = vmatprep.subr.bf16.mxu0 %v1152_v8  ;;  %v472_v8 = vld [vmem:[%s1870_s15 + $0x780] sm:$0xff] }
  0xca   : > { %v1046_v16 = vpack.c.bf16 %v480_v9, %v472_v8  ;;  %v307_v8 = vld [vmem:[%s1870_s15 + $0x258] sm:$0xff] }
  0xcb   : > { %v303_v9 = vld [vmem:[%s1870_s15 + $0x238] sm:$0xff] }
  0xce   : > { %1027 = vmatpush1.bf16.xpose.msra.mxu1 %v1026_v17  ;;  %v1174_v17 = vpack.c.bf16 %v484_v11, %v476_v10  ;;  %v311_v10 = vld [vmem:[%s1870_s15 + $0x278] sm:$0xff] }
  0xcf   : > { %1029 = vmatprep.subr.bf16.mxu1 %v1028_v19  ;;  %v1176_v19 = vpack.c.bf16 %v247_v15, %v239_v14  ;;  %v1192_v14 = vpack.c.bf16 %v311_v10, %v303_v9  ;;  %v298_v15 = vld [vmem:[%s1870_s15 + $0x210] sm:$0xff]  ;;  %v391_v9 = vld [vmem:[%s1870_s15 + $0x4f8] sm:$0xff] }
  0xd0   : > { %1155 = vmatpush1.bf16.xpose.msra.mxu0 %v1154_v18  ;;  %v1048_v18 = vpack.c.bf16 %v243_v13, %v235_v12 }
  0xd1   : > { %1157 = vmatprep.subr.bf16.mxu0 %v1156_v21  ;;  %v491_v21 = vsub.s32 0, %v1928_v5 }
  0xd6   : > { %1031 = vmatpush1.bf16.xpose.msra.mxu1 %v1030_v30  ;;  %v492_v30 = vrot.slane %v1942_v20, %v491_v21  ;;  %v323_v21 = vld [vmem:[%s1870_s15 + $0x2d8] sm:$0xff] }
  0xd7   : > { %1033 = vmatprep.subr.bf16.mxu1 %v1032_v32  ;;  %v263_v32 = vld [vmem:[%s1870_s15 + $0xf8] sm:$0xff] }
  0xd8   : > { %1159 = vmatpush1.bf16.xpose.msra.mxu0 %v1158_v31  ;;  %v255_v31 = vld [vmem:[%s1870_s15 + $0xb8] sm:$0xff] }
  0xd9   : > { %1161 = vmatprep.subr.bf16.mxu0 %v1160_v33  ;;  %v519_v33 = vsub.s32 7, %v1928_v5  ;;  %v1180_v38 = vpack.c.bf16 %v263_v32, %v255_v31  ;;  %v326_v31 = vld [vmem:[%s1870_s15 + $0x2f0] sm:$0xff]  ;;  %v331_v32 = vld [vmem:[%s1870_s15 + $0x318] sm:$0xff] }
  0xdb   : > { %v520_v40 = vrot.slane %v1942_v20, %v519_v33  ;;  %v339_v33 = vld [vmem:[%s1870_s15 + $0x358] sm:$0xff] }
  0xde   : > { %1035 = vmatpush1.bf16.xpose.msra.mxu1 %v1034_v42  ;;  %v258_v42 = vld [vmem:[%s1870_s15 + $0xd0] sm:$0xff] }
  0xdf   : > { %1037 = vmatprep.subr.bf16.mxu1 %v1036_v44  ;;  %v262_v44 = vld [vmem:[%s1870_s15 + $0xf0] sm:$0xff]  ;;  %v1054_v49 = vpack.c.bf16 %v258_v42, %v250_v41 }
  0xe0   : > { %1163 = vmatpush1.bf16.xpose.msra.mxu0 %v1162_v43  ;;  %v254_v43 = vld [vmem:[%s1870_s15 + $0xb0] sm:$0xff] }
  0xe1   : > { %1165 = vmatprep.subr.bf16.mxu0 %v1164_v45  ;;  %v267_v45 = vld [vmem:[%s1870_s15 + $0x118] sm:$0xff]  ;;  %v1182_v50 = vpack.c.bf16 %v262_v44, %v254_v43  ;;  %v338_v41 = vld [vmem:[%s1870_s15 + $0x350] sm:$0xff] }
  0xe2   : > { %v1056_v51 = vpack.c.bf16 %v275_v46, %v267_v45  ;;  %v334_v42 = vld [vmem:[%s1870_s15 + $0x330] sm:$0xff]  ;;  %v347_v44 = vld [vmem:[%s1870_s15 + $0x398] sm:$0xff] }
  0xe3   : > { %v342_v43 = vld [vmem:[%s1870_s15 + $0x370] sm:$0xff]  ;;  %v355_v45 = vld [vmem:[%s1870_s15 + $0x3d8] sm:$0xff] }
  0xe4   : > { %v351_v46 = vld [vmem:[%s1870_s15 + $0x3b8] sm:$0xff] }
  0xe6   : > { %1039 = vmatpush1.bf16.xpose.msra.mxu1 %v1038_v54  ;;  %v274_v54 = vld [vmem:[%s1870_s15 + $0x150] sm:$0xff] }
  0xe7   : > { %1041 = vmatprep.subr.bf16.mxu1 %v1040_v56  ;;  %v278_v56 = vld [vmem:[%s1870_s15 + $0x170] sm:$0xff]  ;;  %v1058_v61 = vpack.c.bf16 %v274_v54, %v266_v53 }
  0xe8   : > { %1167 = vmatpush1.bf16.xpose.msra.mxu0 %v1166_v55  ;;  %v270_v55 = vld [vmem:[%s1870_s15 + $0x130] sm:$0xff] }
  0xe9   : > { %1169 = vmatprep.subr.bf16.mxu0 %v1168_v57  ;;  %v283_v57 = vld [vmem:[%s1870_s15 + $0x198] sm:$0xff]  ;;  %v1186_v62 = vpack.c.bf16 %v278_v56, %v270_v55  ;;  %v354_v53 = vld [vmem:[%s1870_s15 + $0x3d0] sm:$0xff] }
  0xea   : > { %v1060_v63 = vpack.c.bf16 %v291_v58, %v283_v57  ;;  %v350_v54 = vld [vmem:[%s1870_s15 + $0x3b0] sm:$0xff]  ;;  %v363_v56 = vld [vmem:[%s1870_s15 + $0x418] sm:$0xff] }
  0xeb   : > { %v358_v55 = vld [vmem:[%s1870_s15 + $0x3f0] sm:$0xff]  ;;  %v371_v57 = vld [vmem:[%s1870_s15 + $0x458] sm:$0xff] }
  0xec   : > { %v367_v58 = vld [vmem:[%s1870_s15 + $0x438] sm:$0xff] }
  0xee   : > { %1043 = vmatpush1.bf16.xpose.msra.mxu1 %v1042_v3  ;;  %v290_v3 = vld [vmem:[%s1870_s15 + $0x1d0] sm:$0xff] }
  0xef   : > { %1045 = vmatprep.subr.bf16.mxu1 %v1044_v6  ;;  %v294_v6 = vld [vmem:[%s1870_s15 + $0x1f0] sm:$0xff]  ;;  %v1062_v11 = vpack.c.bf16 %v290_v3, %v282_v2 }
  0xf0   : > { %1171 = vmatpush1.bf16.xpose.msra.mxu0 %v1170_v4  ;;  %v286_v4 = vld [vmem:[%s1870_s15 + $0x1b0] sm:$0xff] }
  0xf1   : > { %1173 = vmatprep.subr.bf16.mxu0 %v1172_v7  ;;  %v299_v7 = vld [vmem:[%s1870_s15 + $0x218] sm:$0xff]  ;;  %v1190_v12 = vpack.c.bf16 %v294_v6, %v286_v4  ;;  %v370_v2 = vld [vmem:[%s1870_s15 + $0x450] sm:$0xff] }
  0xf2   : > { %v1064_v13 = vpack.c.bf16 %v307_v8, %v299_v7  ;;  %v366_v3 = vld [vmem:[%s1870_s15 + $0x430] sm:$0xff]  ;;  %v379_v6 = vld [vmem:[%s1870_s15 + $0x498] sm:$0xff] }
  0xf3   : > { %v374_v4 = vld [vmem:[%s1870_s15 + $0x470] sm:$0xff]  ;;  %v387_v7 = vld [vmem:[%s1870_s15 + $0x4d8] sm:$0xff] }
  0xf4   : > { %v383_v8 = vld [vmem:[%s1870_s15 + $0x4b8] sm:$0xff] }
  0xf6   : > { %1047 = vmatpush1.bf16.xpose.msra.mxu1 %v1046_v16  ;;  %v306_v16 = vld [vmem:[%s1870_s15 + $0x250] sm:$0xff] }
  0xf7   : > { %1049 = vmatprep.subr.bf16.mxu1 %v1048_v18  ;;  %v310_v18 = vld [vmem:[%s1870_s15 + $0x270] sm:$0xff]  ;;  %v1066_v24 = vpack.c.bf16 %v306_v16, %v298_v15 }
  0xf8   : > { %1175 = vmatpush1.bf16.xpose.msra.mxu0 %v1174_v17  ;;  %v302_v17 = vld [vmem:[%s1870_s15 + $0x230] sm:$0xff] }
  0xf9   : > { %1177 = vmatprep.subr.bf16.mxu0 %v1176_v19  ;;  %v315_v19 = vld [vmem:[%s1870_s15 + $0x298] sm:$0xff]  ;;  %v1194_v25 = vpack.c.bf16 %v310_v18, %v302_v17  ;;  %v386_v15 = vld [vmem:[%s1870_s15 + $0x4d0] sm:$0xff] }
  0xfa   : > { %v1068_v26 = vpack.c.bf16 %v323_v21, %v315_v19  ;;  %v382_v16 = vld [vmem:[%s1870_s15 + $0x4b0] sm:$0xff]  ;;  %v395_v18 = vld [vmem:[%s1870_s15 + $0x518] sm:$0xff] }
  0xfb   : > { %v390_v17 = vld [vmem:[%s1870_s15 + $0x4f0] sm:$0xff]  ;;  %v403_v19 = vld [vmem:[%s1870_s15 + $0x558] sm:$0xff] }
  0xfc   : > { %v399_v21 = vld [vmem:[%s1870_s15 + $0x538] sm:$0xff] }
  0xfd   : > { %594 = vmatmul.mubr.f32.vlgmr.msra.gmra.mrb[0].mxu1 %v492_v30  ;;  %v318_v30 = vld [vmem:[%s1870_s15 + $0x2b0] sm:$0xff] }
  0xfe   : > { %1051 = vmatpush1.bf16.xpose.msra.mxu1 %v1050_v34  ;;  %664 = vmatprep.mubr.f32.mxu1 %v504_v39  ;;  %v335_v34 = vld [vmem:[%s1870_s15 + $0x338] sm:$0xff] }
  0xff   : > { %736 = vmatmul.mubr.f32.vlgmr.msra.gmra.mrb[0].mxu0 %v508_v35  ;;  %1053 = vmatprep.subr.bf16.mxu1 %v1052_v37  ;;  %v343_v35 = vld [vmem:[%s1870_s15 + $0x378] sm:$0xff]  ;;  %v1198_v37 = vpack.c.bf16 %v326_v31, %v318_v30  ;;  %v406_v30 = vld [vmem:[%s1870_s15 + $0x570] sm:$0xff] }
 0x100   : > { %1179 = vmatpush1.bf16.xpose.msra.mxu0 %v1178_v36  ;;  %806 = vmatprep.mubr.f32.mxu0 %v520_v40  ;;  %v1070_v36 = vpack.c.bf16 %v322_v29, %v314_v28  ;;  %v1200_v39 = vpack.c.bf16 %v343_v35, %v335_v34  ;;  %v330_v40 = vld [vmem:[%s1870_s15 + $0x310] sm:$0xff]  ;;  %v411_v31 = vld [vmem:[%s1870_s15 + $0x598] sm:$0xff] }
 0x101   : > { %1181 = vmatprep.subr.bf16.mxu0 %v1180_v38  ;;  %v1072_v38 = vpack.c.bf16 %v339_v33, %v331_v32  ;;  %v1074_v48 = vpack.c.bf16 %v338_v41, %v330_v40  ;;  %v402_v28 = vld [vmem:[%s1870_s15 + $0x550] sm:$0xff]  ;;  %v419_v32 = vld [vmem:[%s1870_s15 + $0x5d8] sm:$0xff] }
 0x102   : > { %v398_v29 = vld [vmem:[%s1870_s15 + $0x530] sm:$0xff]  ;;  %v415_v33 = vld [vmem:[%s1870_s15 + $0x5b8] sm:$0xff] }
 0x103   : > { %v423_v34 = vld [vmem:[%s1870_s15 + $0x5f8] sm:$0xff]  ;;  %v418_v40 = vld [vmem:[%s1870_s15 + $0x5d0] sm:$0xff] }
 0x104   : > { %v414_v41 = vld [vmem:[%s1870_s15 + $0x5b0] sm:$0xff] }
 0x106   : > { %1055 = vmatpush1.bf16.xpose.msra.mxu1 %v1054_v49  ;;  %v1202_v49 = vpack.c.bf16 %v342_v43, %v334_v42  ;;  %v422_v42 = vld [vmem:[%s1870_s15 + $0x5f0] sm:$0xff]  ;;  %v427_v43 = vld [vmem:[%s1870_s15 + $0x618] sm:$0xff] }
 0x107   : > { %1057 = vmatprep.subr.bf16.mxu1 %v1056_v51  ;;  %v1204_v51 = vpack.c.bf16 %v359_v47, %v351_v46  ;;  %v439_v46 = vld [vmem:[%s1870_s15 + $0x678] sm:$0xff] }
 0x108   : > { %1183 = vmatpush1.bf16.xpose.msra.mxu0 %v1182_v50  ;;  %v1076_v50 = vpack.c.bf16 %v355_v45, %v347_v44  ;;  %v435_v44 = vld [vmem:[%s1870_s15 + $0x658] sm:$0xff] }
 0x109   : > { %1185 = vmatprep.subr.bf16.mxu0 %v1184_v52  ;;  %v346_v52 = vld [vmem:[%s1870_s15 + $0x390] sm:$0xff]  ;;  %v431_v45 = vld [vmem:[%s1870_s15 + $0x638] sm:$0xff] }
 0x10a   : > { %v1078_v60 = vpack.c.bf16 %v354_v53, %v346_v52  ;;  %v434_v52 = vld [vmem:[%s1870_s15 + $0x650] sm:$0xff] }
 0x10b   : > { %v430_v53 = vld [vmem:[%s1870_s15 + $0x630] sm:$0xff] }
 0x10e   : > { %1059 = vmatpush1.bf16.xpose.msra.mxu1 %v1058_v61  ;;  %v1206_v61 = vpack.c.bf16 %v358_v55, %v350_v54  ;;  %v438_v54 = vld [vmem:[%s1870_s15 + $0x670] sm:$0xff]  ;;  %v443_v55 = vld [vmem:[%s1870_s15 + $0x698] sm:$0xff] }
 0x10f   : > { %1061 = vmatprep.subr.bf16.mxu1 %v1060_v63  ;;  %v1208_v63 = vpack.c.bf16 %v375_v59, %v367_v58  ;;  %v455_v58 = vld [vmem:[%s1870_s15 + $0x6f8] sm:$0xff] }
 0x110   : > { %1187 = vmatpush1.bf16.xpose.msra.mxu0 %v1186_v62  ;;  %v1080_v62 = vpack.c.bf16 %v371_v57, %v363_v56  ;;  %v451_v56 = vld [vmem:[%s1870_s15 + $0x6d8] sm:$0xff] }
 0x111   : > { %1189 = vmatprep.subr.bf16.mxu0 %v1188_v1  ;;  %v362_v1 = vld [vmem:[%s1870_s15 + $0x410] sm:$0xff]  ;;  %v447_v57 = vld [vmem:[%s1870_s15 + $0x6b8] sm:$0xff] }
 0x112   : > { %v1082_v10 = vpack.c.bf16 %v370_v2, %v362_v1  ;;  %v450_v1 = vld [vmem:[%s1870_s15 + $0x6d0] sm:$0xff] }
 0x113   : > { %v446_v2 = vld [vmem:[%s1870_s15 + $0x6b0] sm:$0xff] }
 0x116   : > { %1063 = vmatpush1.bf16.xpose.msra.mxu1 %v1062_v11  ;;  %v1210_v11 = vpack.c.bf16 %v374_v4, %v366_v3  ;;  %v454_v3 = vld [vmem:[%s1870_s15 + $0x6f0] sm:$0xff]  ;;  %v459_v4 = vld [vmem:[%s1870_s15 + $0x718] sm:$0xff] }
 0x117   : > { %1065 = vmatprep.subr.bf16.mxu1 %v1064_v13  ;;  %v1212_v13 = vpack.c.bf16 %v391_v9, %v383_v8  ;;  %v471_v8 = vld [vmem:[%s1870_s15 + $0x778] sm:$0xff] }
 0x118   : > { %1191 = vmatpush1.bf16.xpose.msra.mxu0 %v1190_v12  ;;  %v1084_v12 = vpack.c.bf16 %v387_v7, %v379_v6  ;;  %v467_v6 = vld [vmem:[%s1870_s15 + $0x758] sm:$0xff] }
 0x119   : > { %1193 = vmatprep.subr.bf16.mxu0 %v1192_v14  ;;  %v378_v14 = vld [vmem:[%s1870_s15 + $0x490] sm:$0xff]  ;;  %v463_v7 = vld [vmem:[%s1870_s15 + $0x738] sm:$0xff] }
 0x11a   : > { %v1086_v23 = vpack.c.bf16 %v386_v15, %v378_v14  ;;  %v466_v14 = vld [vmem:[%s1870_s15 + $0x750] sm:$0xff] }
 0x11b   : > { %v462_v15 = vld [vmem:[%s1870_s15 + $0x730] sm:$0xff] }
 0x11e   : > { %1067 = vmatpush1.bf16.xpose.msra.mxu1 %v1066_v24  ;;  %v1214_v24 = vpack.c.bf16 %v390_v17, %v382_v16  ;;  %v470_v16 = vld [vmem:[%s1870_s15 + $0x770] sm:$0xff]  ;;  %v475_v17 = vld [vmem:[%s1870_s15 + $0x798] sm:$0xff] }
 0x11f   : > { %1069 = vmatprep.subr.bf16.mxu1 %v1068_v26  ;;  %v1216_v26 = vpack.c.bf16 %v407_v22, %v399_v21  ;;  %v487_v21 = vld [vmem:[%s1870_s15 + $0x7f8] sm:$0xff] }
 0x120   : > { %1195 = vmatpush1.bf16.xpose.msra.mxu0 %v1194_v25  ;;  %v1088_v25 = vpack.c.bf16 %v403_v19, %v395_v18  ;;  %v483_v18 = vld [vmem:[%s1870_s15 + $0x7d8] sm:$0xff] }
 0x121   : > { %1197 = vmatprep.subr.bf16.mxu0 %v1196_v27  ;;  %v394_v27 = vld [vmem:[%s1870_s15 + $0x510] sm:$0xff]  ;;  %v479_v19 = vld [vmem:[%s1870_s15 + $0x7b8] sm:$0xff] }
 0x122   : > { %v1090_v35 = vpack.c.bf16 %v402_v28, %v394_v27  ;;  %v482_v27 = vld [vmem:[%s1870_s15 + $0x7d0] sm:$0xff] }
 0x123   : > { %v478_v28 = vld [vmem:[%s1870_s15 + $0x7b0] sm:$0xff] }
 0x126   : > { %1071 = vmatpush1.bf16.xpose.msra.mxu1 %v1070_v36  ;;  %v1218_v36 = vpack.c.bf16 %v406_v30, %v398_v29  ;;  %v486_v29 = vld [vmem:[%s1870_s15 + $0x7f0] sm:$0xff] }
 0x127   : > { %1073 = vmatprep.subr.bf16.mxu1 %v1072_v38  ;;  %v1220_v38 = vpack.c.bf16 %v423_v34, %v415_v33  ;;  %v515_v33 = vsub.s32 6, %v1928_v5 }
 0x128   : > { %1199 = vmatpush1.bf16.xpose.msra.mxu0 %v1198_v37  ;;  %v1092_v37 = vpack.c.bf16 %v419_v32, %v411_v31  ;;  %v1238_v31 = vpack.c.bf16 %v486_v29, %v478_v28  ;;  %v499_v32 = vsub.s32 2, %v1928_v5 }
 0x129   : > { %1201 = vmatprep.subr.bf16.mxu0 %v1200_v39  ;;  %v410_v39 = vld [vmem:[%s1870_s15 + $0x590] sm:$0xff] }
 0x12a   : > { %v1094_v47 = vpack.c.bf16 %v418_v40, %v410_v39  ;;  %v500_v34 = vrot.slane %v1942_v20, %v499_v32 }
 0x12e   : > { %1075 = vmatpush1.bf16.xpose.msra.mxu1 %v1074_v48  ;;  %v1222_v48 = vpack.c.bf16 %v422_v42, %v414_v41 }
 0x12f   : > { %1077 = vmatprep.subr.bf16.mxu1 %v1076_v50  ;;  %v1224_v50 = vpack.c.bf16 %v439_v46, %v431_v45 }
 0x130   : > { %1203 = vmatpush1.bf16.xpose.msra.mxu0 %v1202_v49  ;;  %v1096_v49 = vpack.c.bf16 %v435_v44, %v427_v43 }
 0x131   : > { %1205 = vmatprep.subr.bf16.mxu0 %v1204_v51  ;;  %v426_v51 = vld [vmem:[%s1870_s15 + $0x610] sm:$0xff] }
 0x132   : > { %v1098_v59 = vpack.c.bf16 %v434_v52, %v426_v51 }
 0x136   : > { %1079 = vmatpush1.bf16.xpose.msra.mxu1 %v1078_v60  ;;  %v1226_v60 = vpack.c.bf16 %v438_v54, %v430_v53 }
 0x137   : > { %1081 = vmatprep.subr.bf16.mxu1 %v1080_v62  ;;  %v1228_v62 = vpack.c.bf16 %v455_v58, %v447_v57 }
 0x138   : > { %1207 = vmatpush1.bf16.xpose.msra.mxu0 %v1206_v61  ;;  %v1100_v61 = vpack.c.bf16 %v451_v56, %v443_v55 }
 0x139   : > { %1209 = vmatprep.subr.bf16.mxu0 %v1208_v63  ;;  %v442_v63 = vld [vmem:[%s1870_s15 + $0x690] sm:$0xff] }
 0x13a   : > { %v1102_v9 = vpack.c.bf16 %v450_v1, %v442_v63 }
 0x13e   : > { %1083 = vmatpush1.bf16.xpose.msra.mxu1 %v1082_v10  ;;  %v1230_v10 = vpack.c.bf16 %v454_v3, %v446_v2 }
 0x13f   : > { %1085 = vmatprep.subr.bf16.mxu1 %v1084_v12  ;;  %v1232_v12 = vpack.c.bf16 %v471_v8, %v463_v7 }
 0x140   : > { %1211 = vmatpush1.bf16.xpose.msra.mxu0 %v1210_v11  ;;  %v1104_v11 = vpack.c.bf16 %v467_v6, %v459_v4 }
 0x141   : > { %1213 = vmatprep.subr.bf16.mxu0 %v1212_v13  ;;  %v458_v13 = vld [vmem:[%s1870_s15 + $0x710] sm:$0xff] }
 0x142   : > { %v1106_v22 = vpack.c.bf16 %v466_v14, %v458_v13 }
 0x146   : > { %1087 = vmatpush1.bf16.xpose.msra.mxu1 %v1086_v23  ;;  %v1234_v23 = vpack.c.bf16 %v470_v16, %v462_v15 }
 0x147   : > { %1089 = vmatprep.subr.bf16.mxu1 %v1088_v25  ;;  %v1236_v25 = vpack.c.bf16 %v487_v21, %v479_v19 }
 0x148   : > { %1215 = vmatpush1.bf16.xpose.msra.mxu0 %v1214_v24  ;;  %v1108_v24 = vpack.c.bf16 %v483_v18, %v475_v17 }
 0x149   : > { %1217 = vmatprep.subr.bf16.mxu0 %v1216_v26  ;;  %v474_v26 = vld [vmem:[%s1870_s15 + $0x790] sm:$0xff] }
 0x14a   : > { %v1110_v30 = vpack.c.bf16 %v482_v27, %v474_v26 }
 0x14e   : > { %1091 = vmatpush1.bf16.xpose.msra.mxu1 %v1090_v35  ;;  %v516_v35 = vrot.slane %v1942_v20, %v515_v33 }
 0x14f   : > { %1093 = vmatprep.subr.bf16.mxu1 %v1092_v37 }
 0x150   : > { %1219 = vmatpush1.bf16.xpose.msra.mxu0 %v1218_v36  ;;  %v1600_v36 = vmov 1966171168  }
 0x151   : > { %1221 = vmatprep.subr.bf16.mxu0 %v1220_v38  ;;  %v817_v37 = vunpack.c.l.s4 %v1600_v36 }
 0x153   : > { %v818_v38 = vunpack.c.0.s8 %v817_v37 }
 0x155   : > { %v821_v45 = vsub.s32 %v818_v38, %v1928_v5 }
 0x156   : > { %1095 = vmatpush1.bf16.xpose.msra.mxu1 %v1094_v47  ;;  %v230_v47 = vld [vmem:[%s1879_s17] sm:$0x3] }
 0x157   : > { %1097 = vmatprep.subr.bf16.mxu1 %v1096_v49 }
 0x158   : > { %1223 = vmatpush1.bf16.xpose.msra.mxu0 %v1222_v48 }
 0x159   : > { %1225 = vmatprep.subr.bf16.mxu0 %v1224_v50 }
 0x15e   : > { %1099 = vmatpush1.bf16.xpose.msra.mxu1 %v1098_v59 }
 0x15f   : > { %1101 = vmatprep.subr.bf16.mxu1 %v1100_v61 }
 0x160   : > { %1227 = vmatpush1.bf16.xpose.msra.mxu0 %v1226_v60 }
 0x161   : > { %1229 = vmatprep.subr.bf16.mxu0 %v1228_v62 }
 0x166   : > { %1103 = vmatpush1.bf16.xpose.msra.mxu1 %v1102_v9 }
 0x167   : > { %1105 = vmatprep.subr.bf16.mxu1 %v1104_v11 }
 0x168   : > { %1231 = vmatpush1.bf16.xpose.msra.mxu0 %v1230_v10 }
 0x169   : > { %1233 = vmatprep.subr.bf16.mxu0 %v1232_v12 }
 0x16e   : > { %1107 = vmatpush1.bf16.xpose.msra.mxu1 %v1106_v22 }
 0x16f   : > { %1109 = vmatprep.subr.bf16.mxu1 %v1108_v24 }
 0x170   : > { %1235 = vmatpush1.bf16.xpose.msra.mxu0 %v1234_v23 }
 0x171   : > { %1237 = vmatprep.subr.bf16.mxu0 %v1236_v25 }
 0x176   : > { %1111 = vmatpush1.bf16.xpose.msra.mxu1 %v1110_v30 }
 0x178   : > { %1239 = vmatpush1.bf16.xpose.msra.mxu0 %v1238_v31 }
 0x17d   : > { %665 = vmatmul.mubr.f32.vlgmr.msra.gmra.mrb[0].mxu1 %v500_v34 }
 0x17f   : > { %807 = vmatmul.mubr.f32.vlgmr.msra.gmra.mrb[0].mxu0 %v516_v35 }
 0x250   : > { %v666_v39 = vpop.f32.mrb[0].mxu1 }
 0x251   : > { %v668_v41 = vpop.f32.mrb[1].mxu1 }
 0x252   : > { %v808_v40 = vpop.f32.mrb[0].mxu0 }
 0x253   : > { %v1240_v42 = vadd.f32 %v808_v40, %v666_v39  ;;  %v810_v43 = vpop.f32.mrb[1].mxu0 }
 0x254   : > { %v1241_v44 = vadd.f32 %v810_v43, %v668_v41 }
 0x256   : > { %v815_v46 = vcombine.low %v1240_v42, %v1241_v44 }
 0x258   : > { %v822_v20 = vrot.slane %v815_v46, %v821_v45 }
 0x25a   : > { %v829_v48 = vrot.slane %v822_v20, %v821_v45 }
 0x25c   : > { %v831_v49 = vadd.f32 %v829_v48, %v230_v47 }
 0x25e   : > { %836 = vst.msk [vmem:[%s1879_s17] sm:$0x3] %vm834_vm1, %v831_v49 }
 0x25f   : > { %1455 = shalt.err (!%p1452_p10)
}
 0x260   : > { %s1456_s28 = scalar_lea.hbm %s2170_s21, 32  ;;  %s1460_s6 = scalar_lea.hbm %s2252_s2, 64 }
 0x261   : > { %p1457_p7 = scmp.ne.s32.totalorder %s2170_s21, %s1456_s28  ;;  %p1461_p0 = scmp.lt.u32.totalorder %s2170_s21, %s2252_s2 }
 0x262   : > { %p1462_p11 = scmp.lt.u32.totalorder %s1460_s6, %s1456_s28  ;;  %p1464_p5 = scmp.lt.u32.totalorder %s1456_s28, %s2170_s21 }
 0x263   : > { %p1458_p1 = pnand %p1457_p7, %p2283_p13 }
 0x264   : > { %p1463_p4 = por %p1462_p11, %p1461_p0 }
 0x265   : > { %p1459_p3 = pneg %p1458_p1 }
 0x266   : > { %p1465_p2 = por %p1464_p5, %p1463_p4 }
 0x268   : > { %p1466_p12 = pnand %p1465_p2, %p1459_p3 }
 0x26a   : > { %1469 = shalt.err (!%p1466_p12)
}
 0x26b   : > { %1250 = dma.vmem_to_hbm [thread:$0]  (%p2283_p13), %s2172_s4, 32, %s2170_s21, %s838_s0  }
 0x26c PF: > { %p1264_p6 = scmp.ge.s32.totalorder %s1592_s22, 2  ;;  %s864_s26 = sand.u32 1, %s1540_s9  }
 0x26d   : > { %p2284_p9 = scmp.ne.s32.totalorder %s2274_s30, 0  ;;  %s865_s5 = scalar_lea.sflag [#allocation4], %s864_s26 }
 0x26f   : > { %p1260_p8 = pnand %p1264_p6, %p2284_p9 }
 0x271   : > { %1535 = dma.done.wait (!%p1260_p8), %s865_s5, 32  }
 0x272   : > { %1537 = vsyncadd (!%p1260_p8), %s865_s5, 4294967264  ;;  %s21_s22 = sadd.s32 1, %s1592_s22   ;;  %s2286_s12 = sld [smem:[#allocation17_spill]] }
 0x273   : > { %p2203_p10 = scmp.ge.s32.totalorder %s21_s22, 6   ;;  %s2287_s18 = sld [smem:[#allocation16_spill]] }
 0x274   : > { %s2288_s4 = sld [smem:[#allocation11_spill]]  ;;  %s2289_s27 = sld [smem:[#allocation15_spill]] }
 0x275   : > { %s2290_s19 = sld [smem:[#allocation12_spill]]  ;;  %s2291_s30 = sld [smem:[#allocation13_spill]] }
 0x276   : > { %s2292_s21 = sld [smem:[#allocation14_spill]]  ;;  %s2294_s9 = smov %s1544_s10 }
 0x277   : > { %s2295_s10 = smov %s1548_s11  ;;  %s2300_s15 = smov %s1568_s16 }
 0x278   : > { %s2296_s11 = smov %s2286_s12  ;;  %s2297_s12 = smov %s1556_s13 }
 0x279   : > { %s2298_s13 = smov %s1560_s14  ;;  %s2299_s14 = smov %s2287_s18 }
 0x27a   : > { %s2301_s16 = smov %s2288_s4  ;;  %s2302_s17 = smov %s2289_s27 }
 0x27b   : > { %s2303_s18 = smov %s1584_s20  ;;  %s2304_s20 = smov %s2291_s30 }
 0x27c   :  { %20 = sbr.rel (!%p2203_p10) target bundleno = 14 (0xe), region = 90 }
 0x283   :  { %870 = vsyncpa [#allocation3], 1 }
 0x284   :  { %872 = vsyncpa [#allocation3 + $0x1], 1 }
 0x285   :  { %873 = vsyncpa [#allocation6], 1 }
 0x286   :  { %875 = vsyncpa [#allocation6 + $0x1], 1 }
 0x287   :  { %876 = vsyncpa [#allocation4], 1 }
 0x288   :  { %878 = vsyncpa [#allocation4 + $0x1], 1 }

</bundles_post_ra>
